<compile_context>
chip_gen: v5e
topology: v5e:2x2
jax: 0.10.0
libtpu: 0.0.40
codegen_flags: <defaults>
</compile_context>

<pallas_src>
import jax
import jax.numpy as jnp
from jax.experimental import pallas as pl
from jax.experimental.pallas import tpu as pltpu


# ----------------------------------------------------------------------------
# Generation-aware tuning knobs.
# ----------------------------------------------------------------------------
def _chip_profile():
    """Return (block_byte_budget, vmem_limit_bytes_or_None, two_tensorcores)."""
    kind = ""
    try:
        kind = jax.devices()[0].device_kind.lower()
    except Exception:
        pass
    if "v7" in kind or "tpu7" in kind:
        # v7x: 64 MiB physical VMEM, 32 MiB scoped default, 2 TensorCores.
        # 4 MiB blocks -> 2 (in+out) * 2 (double buffer) * 4 MiB = 16 MiB
        # resident, comfortably inside the default scoped limit.
        return 4 << 20, None, True
    if "v6" in kind:
        # v6e: 128 MiB physical VMEM; raise scoped limit and use bigger blocks
        # to cut per-grid-step overhead on this purely HBM-BW-bound copy.
        return 6 << 20, 64 << 20, False
    # v5e / unknown: conservative (16 MiB scoped default).
    return 2 << 20, None, False


# ----------------------------------------------------------------------------
# Materializing copy kernel (lane-dense, byte-budgeted tiling).
# ----------------------------------------------------------------------------
def _copy_kernel(x_ref, o_ref):
    o_ref[...] = x_ref[...]


def _lane_dense_view(x: jax.Array) -> jax.Array:
    """Reshape to 2D (rows, cols) with cols the widest multiple of 128 that
    divides the total size while keeping rows >= 8 when possible.
    Caller guarantees x.size % 128 == 0."""
    total = x.size
    best = 128
    c = 128
    cap = min(total, 32768)
    while c <= cap:
        if total % c == 0 and total // c >= 8:
            best = c
        c += 128
    return x.reshape(total // best, best)


def _pick_tile_rows(rows: int, cols: int, itemsize: int,
                    budget_bytes: int, two_cores: bool) -> int:
    """Byte-budgeted, dtype-aware row tile that divides `rows`."""
    min_rows = max(8, 32 // itemsize)  # f32 -> 8, bf16 -> 16, int8/fp8 -> 32
    if rows <= min_rows or rows % min_rows != 0:
        # Full-extent rows is always legal (block dim == array dim).
        return rows
    budget_rows = max(min_rows,
                      (budget_bytes // (cols * itemsize)) // min_rows * min_rows)
    tile = min(rows, budget_rows)
    while rows % tile != 0:   # terminates: min_rows divides rows
        tile -= min_rows
    # Megacore split only on v7x (2 TCs) and only when each half is >= 1 MiB;
    # on v5e/v6e (single TC) splitting just adds ~0.35 us/step for nothing.
    if two_cores and tile == rows:
        half = rows // 2
        if half % min_rows == 0 and half * cols * itemsize >= (1 << 20):
            tile = half
    return tile


def _copy_identity(x: jax.Array) -> jax.Array:
    orig_shape = x.shape
    total = x.size
    itemsize = x.dtype.itemsize
    budget_bytes, vmem_limit, two_cores = _chip_profile()

    padded = False
    if total % 128 == 0:
        x2 = _lane_dense_view(x)
    else:
        # Pad once in the wrapper to an (8, 128*k) slab so every store inside
        # the kernel is an unmasked, lane-dense `vst`; slice back afterwards.
        flat = x.reshape(-1)
        pad_to = ((total + 1023) // 1024) * 1024   # multiple of 8*128
        flat = jnp.pad(flat, (0, pad_to - total))
        x2 = flat.reshape(8, pad_to // 8)
        padded = True

    rows, cols = x2.shape
    tensor_bytes = rows * cols * itemsize

    # Small tensors: one full-extent block; overhead dominates, not HBM BW.
    if tensor_bytes <= (2 << 20):
        tile_rows = rows
    else:
        tile_rows = _pick_tile_rows(rows, cols, itemsize, budget_bytes, two_cores)

    grid = (rows // tile_rows,)
    semantics = ("parallel",) if grid[0] > 1 else ("arbitrary",)

    out2 = pl.pallas_call(
        _copy_kernel,
        out_shape=jax.ShapeDtypeStruct((rows, cols), x2.dtype),
        grid_spec=pltpu.PrefetchScalarGridSpec(
            num_scalar_prefetch=0,
            grid=grid,
            in_specs=[pl.BlockSpec((tile_rows, cols), lambda i: (i, 0))],
            out_specs=pl.BlockSpec((tile_rows, cols), lambda i: (i, 0)),
        ),
        compiler_params=pltpu.CompilerParams(
            dimension_semantics=semantics,
            vmem_limit_bytes=vmem_limit,
        ),
        cost_estimate=pl.CostEstimate(
            flops=0,
            transcendentals=0,
            bytes_accessed=2 * tensor_bytes,
        ),
    )(x2)

    if padded:
        return out2.reshape(-1)[:total].reshape(orig_shape)
    return out2.reshape(orig_shape)


# ----------------------------------------------------------------------------
# PrintSize.forward
# ----------------------------------------------------------------------------
def print_size_forward(x: jax.Array, *, materialize: bool = False) -> jax.Array:
    """Pallas implementation of PrintSize.forward: print shape, return x.

    Default path is a pure no-op (no kernel launch, no fusion barrier, no
    input donation); set materialize=True to force a fresh copy via the
    lane-dense Pallas copy kernel.
    """
    # Shapes are static in JAX, so this fires at trace/call time.
    # TODO(synk): per-call runtime printing under jit would need jax.debug.print.
    print(tuple(x.shape))

    if x.size == 0 or not materialize:
        return x
    return _copy_identity(x)


if __name__ == "__main__":
    key = jax.random.PRNGKey(0)
    # NCHW input, small shape consistent with a VGG feature map.
    x = jax.random.normal(key, (2, 4, 16, 16), dtype=jnp.float32)

    # Default path: zero work, returns x directly.
    y = print_size_forward(x)
    y = jax.block_until_ready(y)
    assert y.shape == x.shape
    assert y.dtype == x.dtype
    assert jnp.array_equal(y, x)

    # Materialized lane-dense copy path (exercises the Pallas kernel).
    y2 = print_size_forward(x, materialize=True)
    y2 = jax.block_until_ready(y2)
    assert y2.shape == x.shape
    assert y2.dtype == x.dtype
    assert jnp.array_equal(y2, x)

    # Non-multiple-of-128 size exercises the pad-and-slice path.
    x3 = jax.random.normal(key, (3, 5, 7), dtype=jnp.float32)
    y3 = print_size_forward(x3, materialize=True)
    y3 = jax.block_until_ready(y3)
    assert y3.shape == x3.shape
    assert jnp.array_equal(y3, x3)

    print("KERNEL_OK")
</pallas_src>

<mosaic_0001>
module attributes {stable_mosaic.version = 11 : i64} {
  func.func @_copy_kernel(%arg0: i32, %arg1: memref<8x256xf32, #tpu.memory_space<vmem>>, %arg2: memref<8x256xf32, #tpu.memory_space<vmem>>) attributes {dimension_semantics = [#tpu.dimension_semantics<arbitrary>], iteration_bounds = array<i64: 1>, scalar_prefetch = 0 : i64, scratch_operands = 0 : i64, tpu.core_type = #tpu.core_type<tc>, window_params = [{transform_indices = @transform_0, window_bounds = array<i64: 8, 256>}, {transform_indices = @transform_1, window_bounds = array<i64: 8, 256>}]} {
    %c0 = arith.constant 0 : index
    %c0_0 = arith.constant 0 : index
    %0 = vector.load %arg1[%c0, %c0_0] : memref<8x256xf32, #tpu.memory_space<vmem>>, vector<8x256xf32>
    %c0_1 = arith.constant 0 : index
    %c0_2 = arith.constant 0 : index
    %1 = vector.load %arg2[%c0_1, %c0_2] : memref<8x256xf32, #tpu.memory_space<vmem>>, vector<8x256xf32>
    tpu.vector_store %arg2[%c0_1, %c0_2], %0 {strides = array<i32>} : memref<8x256xf32, #tpu.memory_space<vmem>>, vector<8x256xf32>,
    return
  }
  func.func @transform_0(%arg0: i32) -> (i32, i32) {
    %c0_i32 = arith.constant 0 : i32
    %c0_i32_0 = arith.constant 0 : i32
    return %arg0, %c0_i32 : i32, i32
  }
  func.func @transform_1(%arg0: i32) -> (i32, i32) {
    %c0_i32 = arith.constant 0 : i32
    %c0_i32_0 = arith.constant 0 : i32
    return %arg0, %c0_i32 : i32, i32
  }
}

</mosaic_0001>

<bundles_post_ra>
// kernel: tpu_custom_call.1
= control target key start
LH: loop header
LB: loop body
LE: loop exit
PB: predicated region body
PF: predicated region fallthrough
CT: control target
= control target key end

     0   :  { %6 = vsyncpa [#allocation3], 0  ;;  %s116_s0 = inlined_call_operand.hbm [shape: f32[8,256], index: 0, kind: input, shape index: {}]   ;;  %s117_s1 = inlined_call_operand.hbm [shape: f32[8,256], index: 1, kind: output, shape index: {}]  }
   0x1   :  { %7 = vsyncpa [#allocation4], 0  ;;  %s13_s8 = sshll.u32 %s116_s0, 4  ;;  %s98_s9 = smov [#allocation2]   ;;  %s14_s8 = int_to_ptr.hbm [resolvable:$true] %s13_s8 }
   0x2   :  { %s15_s10 = sshll.u32 %s98_s9, 4  ;;  %s16_s10 = int_to_ptr.vmem [resolvable:$true] %s15_s10 }
   0x3   :  { %18 = dma.hbm_to_vmem [thread:$0]  %s14_s8, 256, %s16_s10, [#allocation3]  }
   0x4   :  { %94 = dma.done.wait [#allocation3], 256  }
   0x5   :  { %95 = vsyncadd [#allocation3], 4294967040  ;;  %s99_s11 = smov [#allocation5]   ;;  %s34_s15 = sshll.u32 %s117_s1, 4  ;;  %v23_v0 = vld [vmem:[#allocation2] sm:$0xff]  ;;  %v24_v1 = vld [vmem:[#allocation2 + $0x8] sm:$0xff]  ;;  %s35_s15 = int_to_ptr.hbm [resolvable:$true] %s34_s15 }
   0x6   :  { %s32_s12 = sshll.u32 %s99_s11, 4  ;;  %25 = vst [vmem:[#allocation5] sm:$0xff] %v23_v0  ;;  %s33_s12 = int_to_ptr.vmem [resolvable:$true] %s32_s12 }
   0x7   :  { %26 = vst [vmem:[#allocation5 + $0x8] sm:$0xff] %v24_v1 }
   0x8   :  { %37 = dma.vmem_to_hbm [thread:$0]  %s33_s12, 256, %s35_s15, [#allocation4]  }
   0x9   :  { %96 = dma.done.wait [#allocation4], 256  }
   0xa   :  { %97 = vsyncadd [#allocation4], 4294967040 }
   0xb   :  { %42 = vsyncpa [#allocation3], 1 }
   0xc   :  { %43 = vsyncpa [#allocation4], 1 }

</bundles_post_ra>
